<compile_context>
chip_gen: v5e
topology: v5e:2x2
jax: 0.10.0
libtpu: 0.0.40
codegen_flags: <defaults>
</compile_context>

<pallas_src>
import jax
import jax.numpy as jnp
from jax.experimental import pallas as pl
from jax.experimental.pallas import tpu as pltpu


def _classifier_kernel(reps_ref, w_ref, b_ref, out_ref, acc_ref):
    """reps_ref: (n_reps, TB, TS, D)  w_ref: (D, Lp)  b_ref: (1, Lp) f32
    out_ref: (TB, Lp) f32             acc_ref: (TB, D) f32 scratch."""
    s = pl.program_id(1)                     # seq axis (reduction, innermost)

    @pl.when(s == 0)
    def _():
        acc_ref[...] = jnp.zeros_like(acc_ref)

    # Accumulate the raw sum over (reps, seq).  The input stays packed (bf16)
    # until the f32 accumulation -- no full-tile f32 copy is materialized.
    for r in range(reps_ref.shape[0]):       # static unroll over the 3 reps
        acc_ref[...] += jnp.sum(reps_ref[r], axis=1, dtype=jnp.float32)

    # Finalize once per batch tile: the 1/(n_reps*S) mean scale is pre-folded
    # into w_ref, so this is just matmul + bias + sigmoid.
    @pl.when(s == pl.num_programs(1) - 1)
    def _():
        mean_q = acc_ref[...].astype(w_ref.dtype)   # bf16 -> single-pass MXU
        logits = jnp.dot(mean_q, w_ref[...], preferred_element_type=jnp.float32)
        out_ref[...] = jax.nn.sigmoid(logits + b_ref[...]).astype(out_ref.dtype)


def _round_up(x, m):
    return ((x + m - 1) // m) * m


def _vmem_budget_bytes():
    """Generation-aware VMEM budget: ~48 MiB of v7x's 64 MiB physical VMEM,
    ~96 MiB of v5e/v6e's 128 MiB.  Fallback assumes the smallest (v7x)."""
    try:
        cap = int(pltpu.get_tpu_info().vmem_capacity_bytes)
    except Exception:
        cap = 64 * 1024 * 1024
    return max(min(cap * 3 // 4, cap - 16 * 1024 * 1024), 8 * 1024 * 1024)


def _choose_tiles(B, S, D, n_reps, elt, l_pad, fixed_bytes, budget):
    """Pick (TB, TS, reps_buffer_count).  B, S are multiples of 8.

    Prefer TS = S (contiguous per-rep DMA chunks) and shrink TB first; only
    shrink TS if even TB = 8 does not fit, in which case use 3-deep buffering
    on the reps stream to hide the exposed DMA latency (tight-VMEM v7x)."""

    def need(tb, ts, nbuf):
        return (nbuf * n_reps * tb * ts * D * elt   # pipelined reps blocks
                + 2 * tb * l_pad * 4                # output block (f32, x2)
                + tb * D * 4                        # f32 accumulator scratch
                + fixed_bytes)                      # resident weight + bias

    def div8_desc(n):
        return [d for d in range(n, 0, -1) if n % d == 0 and d % 8 == 0]

    tb_cands = div8_desc(B)
    # Keep >= 2 batch tiles when B permits so the "parallel" batch axis can be
    # sharded across both v7x TensorCores (harmless on 1-TC v5e/v6e).
    if B >= 16:
        capped = [d for d in tb_cands if d <= B // 2]
        if capped:
            tb_cands = capped

    for tb in tb_cands:                       # TS = S, shrink TB first
        if need(tb, S, 2) <= budget:
            return tb, S, 2
    tb = tb_cands[-1]                         # minimum batch tile (8)
    for nbuf in (3, 2):                       # small tiles -> deeper buffering
        for ts in div8_desc(S):
            if need(tb, ts, nbuf) <= budget:
                return tb, ts, nbuf
    return tb, 8, 2                           # last resort


def classifier_forward(elmo_reps, weight, bias):
    """elmo_reps: (n_reps, B, S, D) (bf16 or f32), weight: (D, L), bias: (L,)."""
    n_reps, B, S, D = elmo_reps.shape
    D_w, L = weight.shape
    assert D_w == D
    inv_count = 1.0 / float(n_reps * S)       # mean over reps AND seq

    # Lane-dense output: pad label dim to a multiple of 128, slice after.
    L_pad = _round_up(max(L, 1), 128)
    # Fold the mean scale into the (already low-precision) weight so the
    # finalize step is just matmul + bias + sigmoid.
    w_scaled = (weight.astype(jnp.float32) * inv_count).astype(weight.dtype)
    w_p = jnp.zeros((D, L_pad), weight.dtype).at[:, :L].set(w_scaled)
    b_p = jnp.zeros((1, L_pad), jnp.float32).at[0, :L].set(bias.astype(jnp.float32))

    # Pad B and S to sublane multiples so any (TB, TS) choice is legal.  Zero
    # seq padding adds nothing to the sum and inv_count keeps the original S.
    B_pad, S_pad = _round_up(B, 8), _round_up(S, 8)
    if (B_pad, S_pad) != (B, S):
        elmo_reps = jnp.pad(
            elmo_reps, ((0, 0), (0, B_pad - B), (0, S_pad - S), (0, 0)))

    elt = elmo_reps.dtype.itemsize
    budget = _vmem_budget_bytes()
    # Resident (constant index_map) weight/bias blocks still cost 2 buffers;
    # they are tiny vs the reps stream so they are simply accounted, not
    # single-buffered.
    fixed_bytes = 2 * (D * L_pad * w_p.dtype.itemsize + L_pad * 4)
    TB, TS, n_buf = _choose_tiles(B_pad, S_pad, D, n_reps, elt, L_pad,
                                  fixed_bytes, budget)
    grid = (B_pad // TB, S_pad // TS)

    if n_buf > 2:
        # VMEM forced small reps tiles: deepen the input pipeline to keep the
        # DMA engine saturated (near-zero compute per step).
        reps_spec = pl.BlockSpec((n_reps, TB, TS, D), lambda b, s: (0, b, s, 0),
                                 pipeline_mode=pl.Buffered(n_buf))
    else:
        reps_spec = pl.BlockSpec((n_reps, TB, TS, D), lambda b, s: (0, b, s, 0))

    cost = pl.CostEstimate(
        flops=n_reps * B_pad * S_pad * D + 2 * B_pad * D * L_pad + B_pad * L_pad,
        transcendentals=B_pad * L_pad,
        bytes_accessed=(n_reps * B_pad * S_pad * D * elt
                        + D * L_pad * w_p.dtype.itemsize
                        + L_pad * 4 + B_pad * L_pad * 4),
    )

    out = pl.pallas_call(
        _classifier_kernel,
        out_shape=jax.ShapeDtypeStruct((B_pad, L_pad), jnp.float32),
        grid_spec=pltpu.PrefetchScalarGridSpec(
            num_scalar_prefetch=0,
            grid=grid,
            in_specs=[
                reps_spec,                                       # (n_reps,TB,TS,D)
                pl.BlockSpec((D, L_pad), lambda b, s: (0, 0)),   # weight, resident
                pl.BlockSpec((1, L_pad), lambda b, s: (0, 0)),   # bias, resident
            ],
            out_specs=pl.BlockSpec((TB, L_pad), lambda b, s: (b, 0)),
            scratch_shapes=[pltpu.VMEM((TB, D), jnp.float32)],
        ),
        compiler_params=pltpu.CompilerParams(
            dimension_semantics=("parallel", "arbitrary"),
            vmem_limit_bytes=int(budget),
        ),
        cost_estimate=cost,
    )(elmo_reps, w_p, b_p)

    return out[:B, :L]


def fake_elmo(character_ids, char_emb, rep_scales):
    """Deterministic stand-in for allennlp Elmo (plain-JAX glue).

    character_ids: (B, S, C) int32 in [0, vocab)
    char_emb:      (vocab, D) f32
    rep_scales:    (3,) f32 -- one scale per "layer representation"
    returns:       (3, B, S, D) bf16  (bf16 halves HBM traffic into the kernel)
    """
    tok = jnp.mean(char_emb[character_ids], axis=2)            # (B, S, D) f32
    reps = rep_scales[:, None, None, None] * tok[None]         # (3, B, S, D)
    return reps.astype(jnp.bfloat16)


if __name__ == "__main__":
    # Small shapes consistent with the module's forward.
    B, S, C = 8, 16, 16         # batch, seq, chars-per-token
    D = 128                     # input_dim (ELMo representation dim)
    L = 4                       # label_dim
    VOCAB = 64                  # character vocab for the stand-in embedding

    key = jax.random.PRNGKey(0)
    k_ids, k_emb, k_w, k_b = jax.random.split(key, 4)

    character_ids = jax.random.randint(k_ids, (B, S, C), 0, VOCAB, dtype=jnp.int32)
    char_emb = jax.random.normal(k_emb, (VOCAB, D), dtype=jnp.float32) * 0.1
    rep_scales = jnp.array([1.0, 0.5, 0.25], dtype=jnp.float32)

    # nn.Linear(input_dim, label_dim): weight (L, D), bias (L,).  The kernel
    # consumes the transposed weight (D, L) in bf16.
    w = jax.random.normal(k_w, (L, D), dtype=jnp.float32) * (1.0 / jnp.sqrt(D))
    b = jax.random.normal(k_b, (L,), dtype=jnp.float32) * 0.01

    elmo_reps = fake_elmo(character_ids, char_emb, rep_scales)   # (3,B,S,D) bf16
    w_bf16 = w.T.astype(jnp.bfloat16)                            # (D, L)

    out = classifier_forward(elmo_reps, w_bf16, b)
    out = jax.block_until_ready(out)

    # Reference in plain JAX (f32 math) from the same bf16-quantized inputs.
    reps_f32 = elmo_reps.astype(jnp.float32)
    w_f32 = w_bf16.astype(jnp.float32)
    ref = jax.nn.sigmoid(
        jnp.dot(jnp.mean(reps_f32, axis=(0, 2)), w_f32,
                precision=jax.lax.Precision.HIGHEST) + b)

    assert out.shape == (B, L)
    # bf16 weights + bf16 MXU epilogue -> bf16-level agreement with the f32 ref.
    assert jnp.allclose(out, ref, atol=2e-3, rtol=2e-3), (out, ref)

    print("KERNEL_OK")
</pallas_src>

<mosaic_0001>
module attributes {stable_mosaic.version = 11 : i64} {
  func.func @_classifier_kernel(%arg0: i32, %arg1: i32, %arg2: memref<3x8x16x128xbf16, #tpu.memory_space<vmem>>, %arg3: memref<128x128xbf16, #tpu.memory_space<vmem>>, %arg4: memref<1x128xf32, #tpu.memory_space<vmem>>, %arg5: memref<8x128xf32, #tpu.memory_space<vmem>>, %arg6: memref<8x128xf32, #tpu.memory_space<vmem>>) attributes {dimension_semantics = [#tpu.dimension_semantics<parallel>, #tpu.dimension_semantics<arbitrary>], iteration_bounds = array<i64: 1, 1>, scalar_prefetch = 0 : i64, scratch_operands = 1 : i64, tpu.core_type = #tpu.core_type<tc>, window_params = [{transform_indices = @transform_0, window_bounds = array<i64: 3, 8, 16, 128>}, {pipeline_mode = #tpu.pipeline_mode<synchronous>, transform_indices = @transform_1, window_bounds = array<i64: 128, 128>}, {pipeline_mode = #tpu.pipeline_mode<synchronous>, transform_indices = @transform_2, window_bounds = array<i64: 1, 128>}, {transform_indices = @transform_3, window_bounds = array<i64: 8, 128>}]} {
    %c0_i32 = arith.constant 0 : i32
    %0 = arith.cmpi eq, %arg1, %c0_i32 : i32
    %1 = arith.extui %0 : i1 to i32
    %c0_i32_0 = arith.constant 0 : i32
    %2 = arith.cmpi ne, %1, %c0_i32_0 : i32
    scf.if %2 {
      %cst_26 = arith.constant 0.000000e+00 : f32
      %27 = vector.broadcast %cst_26 : f32 to vector<8x128xf32>
      %c0_27 = arith.constant 0 : index
      %c0_28 = arith.constant 0 : index
      %28 = vector.load %arg6[%c0_27, %c0_28] : memref<8x128xf32, #tpu.memory_space<vmem>>, vector<8x128xf32>
      tpu.vector_store %arg6[%c0_27, %c0_28], %27 {strides = array<i32>} : memref<8x128xf32, #tpu.memory_space<vmem>>, vector<8x128xf32>,
    } else {
    }
    %c0 = arith.constant 0 : index
    %c0_1 = arith.constant 0 : index
    %3 = vector.load %arg6[%c0, %c0_1] : memref<8x128xf32, #tpu.memory_space<vmem>>, vector<8x128xf32>
    %c0_2 = arith.constant 0 : index
    %c0_3 = arith.constant 0 : index
    %c0_4 = arith.constant 0 : index
    %c0_5 = arith.constant 0 : index
    %4 = vector.load %arg2[%c0_2, %c0_3, %c0_4, %c0_5] : memref<3x8x16x128xbf16, #tpu.memory_space<vmem>>, vector<1x8x16x128xbf16>
    %5 = vector.shape_cast %4 : vector<1x8x16x128xbf16> to vector<8x16x128xbf16>
    %6 = arith.extf %5 : vector<8x16x128xbf16> to vector<8x16x128xf32>
    %cst = arith.constant dense<0.000000e+00> : vector<8x128xf32>
    %7 = vector.multi_reduction <add>, %6, %cst [1] : vector<8x16x128xf32> to vector<8x128xf32>
    %8 = arith.addf %3, %7 : vector<8x128xf32>
    %c0_6 = arith.constant 0 : index
    %c0_7 = arith.constant 0 : index
    %9 = vector.load %arg6[%c0_6, %c0_7] : memref<8x128xf32, #tpu.memory_space<vmem>>, vector<8x128xf32>
    tpu.vector_store %arg6[%c0_6, %c0_7], %8 {strides = array<i32>} : memref<8x128xf32, #tpu.memory_space<vmem>>, vector<8x128xf32>,
    %c0_8 = arith.constant 0 : index
    %c0_9 = arith.constant 0 : index
    %10 = vector.load %arg6[%c0_8, %c0_9] : memref<8x128xf32, #tpu.memory_space<vmem>>, vector<8x128xf32>
    %c1 = arith.constant 1 : index
    %c0_10 = arith.constant 0 : index
    %c0_11 = arith.constant 0 : index
    %c0_12 = arith.constant 0 : index
    %11 = vector.load %arg2[%c1, %c0_10, %c0_11, %c0_12] : memref<3x8x16x128xbf16, #tpu.memory_space<vmem>>, vector<1x8x16x128xbf16>
    %12 = vector.shape_cast %11 : vector<1x8x16x128xbf16> to vector<8x16x128xbf16>
    %13 = arith.extf %12 : vector<8x16x128xbf16> to vector<8x16x128xf32>
    %cst_13 = arith.constant dense<0.000000e+00> : vector<8x128xf32>
    %14 = vector.multi_reduction <add>, %13, %cst_13 [1] : vector<8x16x128xf32> to vector<8x128xf32>
    %15 = arith.addf %10, %14 : vector<8x128xf32>
    %c0_14 = arith.constant 0 : index
    %c0_15 = arith.constant 0 : index
    %16 = vector.load %arg6[%c0_14, %c0_15] : memref<8x128xf32, #tpu.memory_space<vmem>>, vector<8x128xf32>
    tpu.vector_store %arg6[%c0_14, %c0_15], %15 {strides = array<i32>} : memref<8x128xf32, #tpu.memory_space<vmem>>, vector<8x128xf32>,
    %c0_16 = arith.constant 0 : index
    %c0_17 = arith.constant 0 : index
    %17 = vector.load %arg6[%c0_16, %c0_17] : memref<8x128xf32, #tpu.memory_space<vmem>>, vector<8x128xf32>
    %c2 = arith.constant 2 : index
    %c0_18 = arith.constant 0 : index
    %c0_19 = arith.constant 0 : index
    %c0_20 = arith.constant 0 : index
    %18 = vector.load %arg2[%c2, %c0_18, %c0_19, %c0_20] : memref<3x8x16x128xbf16, #tpu.memory_space<vmem>>, vector<1x8x16x128xbf16>
    %19 = vector.shape_cast %18 : vector<1x8x16x128xbf16> to vector<8x16x128xbf16>
    %20 = arith.extf %19 : vector<8x16x128xbf16> to vector<8x16x128xf32>
    %cst_21 = arith.constant dense<0.000000e+00> : vector<8x128xf32>
    %21 = vector.multi_reduction <add>, %20, %cst_21 [1] : vector<8x16x128xf32> to vector<8x128xf32>
    %22 = arith.addf %17, %21 : vector<8x128xf32>
    %c0_22 = arith.constant 0 : index
    %c0_23 = arith.constant 0 : index
    %23 = vector.load %arg6[%c0_22, %c0_23] : memref<8x128xf32, #tpu.memory_space<vmem>>, vector<8x128xf32>
    tpu.vector_store %arg6[%c0_22, %c0_23], %22 {strides = array<i32>} : memref<8x128xf32, #tpu.memory_space<vmem>>, vector<8x128xf32>,
    %c0_i32_24 = arith.constant 0 : i32
    %24 = arith.cmpi eq, %arg1, %c0_i32_24 : i32
    %25 = arith.extui %24 : i1 to i32
    %c0_i32_25 = arith.constant 0 : i32
    %26 = arith.cmpi ne, %25, %c0_i32_25 : i32
    scf.if %26 {
      %c0_26 = arith.constant 0 : index
      %c0_27 = arith.constant 0 : index
      %27 = vector.load %arg6[%c0_26, %c0_27] : memref<8x128xf32, #tpu.memory_space<vmem>>, vector<8x128xf32>
      %28 = arith.truncf %27 : vector<8x128xf32> to vector<8x128xbf16>
      %c0_28 = arith.constant 0 : index
      %c0_29 = arith.constant 0 : index
      %29 = vector.load %arg3[%c0_28, %c0_29] : memref<128x128xbf16, #tpu.memory_space<vmem>>, vector<128x128xbf16>
      %cst_30 = arith.constant dense<0.000000e+00> : vector<8x128xf32>
      %30 = tpu.matmul %28, %29, %cst_30 {dimension_numbers = #tpu.dot_dimension_numbers<[1], [0], [0], [1], [0, 0, 1, 1], [], []>} : vector<8x128xbf16>, vector<128x128xbf16>, vector<8x128xf32> -> vector<8x128xf32>
      %c0_31 = arith.constant 0 : index
      %c0_32 = arith.constant 0 : index
      %31 = vector.load %arg4[%c0_31, %c0_32] : memref<1x128xf32, #tpu.memory_space<vmem>>, vector<1x128xf32>
      %32 = vector.broadcast %31 : vector<1x128xf32> to vector<8x128xf32>
      %33 = arith.addf %30, %32 : vector<8x128xf32>
      %34 = arith.negf %33 : vector<8x128xf32>
      %35 = math.exp %34 : vector<8x128xf32>
      %cst_33 = arith.constant 1.000000e+00 : f32
      %36 = vector.broadcast %cst_33 : f32 to vector<8x128xf32>
      %37 = arith.addf %36, %35 : vector<8x128xf32>
      %38 = arith.divf %36, %37 : vector<8x128xf32>
      %c0_34 = arith.constant 0 : index
      %c0_35 = arith.constant 0 : index
      %39 = vector.load %arg5[%c0_34, %c0_35] : memref<8x128xf32, #tpu.memory_space<vmem>>, vector<8x128xf32>
      tpu.vector_store %arg5[%c0_34, %c0_35], %38 {strides = array<i32>} : memref<8x128xf32, #tpu.memory_space<vmem>>, vector<8x128xf32>,
    } else {
    }
    return
  }
  func.func @transform_0(%arg0: i32, %arg1: i32) -> (i32, i32, i32, i32) {
    %c0_i32 = arith.constant 0 : i32
    %c0_i32_0 = arith.constant 0 : i32
    %c0_i32_1 = arith.constant 0 : i32
    return %c0_i32, %arg0, %arg1, %c0_i32_0 : i32, i32, i32, i32
  }
  func.func @transform_1(%arg0: i32, %arg1: i32) -> (i32, i32) {
    %c0_i32 = arith.constant 0 : i32
    %c0_i32_0 = arith.constant 0 : i32
    %c0_i32_1 = arith.constant 0 : i32
    return %c0_i32, %c0_i32_0 : i32, i32
  }
  func.func @transform_2(%arg0: i32, %arg1: i32) -> (i32, i32) {
    %c0_i32 = arith.constant 0 : i32
    %c0_i32_0 = arith.constant 0 : i32
    %c0_i32_1 = arith.constant 0 : i32
    return %c0_i32, %c0_i32_0 : i32, i32
  }
  func.func @transform_3(%arg0: i32, %arg1: i32) -> (i32, i32) {
    %c0_i32 = arith.constant 0 : i32
    %c0_i32_0 = arith.constant 0 : i32
    return %arg0, %c0_i32 : i32, i32
  }
}

</mosaic_0001>

<bundles_post_ra>
// kernel: tpu_custom_call.1
= control target key start
LH: loop header
LB: loop body
LE: loop exit
PB: predicated region body
PF: predicated region fallthrough
CT: control target
= control target key end

     0   :  { %8 = vsyncpa [#allocation4], 0  ;;  %s819_s0 = inlined_call_operand.hbm [shape: bf16[3,8,16,128], index: 0, kind: input, shape index: {}]   ;;  %s820_s1 = inlined_call_operand.hbm [shape: bf16[128,128], index: 1, kind: input, shape index: {}]   ;;  %s821_s2 = inlined_call_operand.vmem [shape: f32[1,128], index: 2, kind: input, shape index: {}]   ;;  %s822_s3 = inlined_call_operand.hbm [shape: f32[8,128], index: 3, kind: output, shape index: {}]  }
   0x1   :  { %9 = vsyncpa [#allocation7], 0 }
   0x2   :  { %10 = vsyncpa [#allocation5], 0  ;;  %s15_s14 = sshll.u32 %s819_s0, 4  ;;  %s752_s15 = smov [#allocation3]   ;;  %s16_s14 = int_to_ptr.hbm [resolvable:$true] %s15_s14 }
   0x3   :  { %s17_s16 = sshll.u32 %s752_s15, 4  ;;  %s28_s19 = sshll.u32 %s820_s1, 4  ;;  %s18_s16 = int_to_ptr.vmem [resolvable:$true] %s17_s16  ;;  %s29_s19 = int_to_ptr.hbm [resolvable:$true] %s28_s19 }
   0x4   :  { %s753_s20 = smov 64   ;;  %s754_s21 = smov 4  }
   0x5   :  { %23 = dma.hbm_to_vmem [thread:$0]  %s16_s14, 3072, %s18_s16, [#allocation4], %s753_s20, %s753_s20, %s754_s21  }
   0x6   :  { %s755_s22 = smov [#allocation6]  }
   0x7   :  { %s30_s23 = sshll.u32 %s755_s22, 4  ;;  %s31_s23 = int_to_ptr.vmem [resolvable:$true] %s30_s23 }
   0x8   :  { %36 = dma.hbm_to_vmem [thread:$0]  %s29_s19, 1024, %s31_s23, [#allocation7], %s753_s20, %s753_s20, %s754_s21  }
   0x9   :  { %746 = dma.done.wait [#allocation4], 3072  }
   0xa   :  { %747 = vsyncadd [#allocation4], 4294964224 }
   0xb   :  { %748 = dma.done.wait [#allocation7], 1024  }
   0xc   :  { %749 = vsyncadd [#allocation7], 4294966272  ;;  %v546_v0 = vld [vmem:[#allocation6 + $0x38] sm:$0xff]  ;;  %v545_v1 = vld [vmem:[#allocation6 + $0x30] sm:$0xff]  ;;  %vm149_vm0 = vcmask 1041409   ;;  %vm151_vm1 = vcmask 1042434  }
   0xd   :  { %455 = vmatpush.bf16.msra.mxu0 %v546_v0  ;;  %v548_v2 = vld [vmem:[#allocation3] sm:$0xff]   ;;  %v643_v5 = vld [vmem:[#allocation3 + $0x8] sm:$0xff]   ;;  %v644_v6 = vld [vmem:[#allocation3 + $0x10] sm:$0xff]   ;;  %vm153_vm2 = vcmask 1043459   ;;  %vm155_vm3 = vcmask 1044484   ;;  %vm157_vm4 = vcmask 1045509  }
   0xe   :  { %v549_v3 = vunpack.c.l.bf16 %v548_v2  ;;  %v550_v4 = vunpack.c.h.bf16 %v548_v2  ;;  %v645_v7 = vld [vmem:[#allocation3 + $0x18] sm:$0xff]   ;;  %v553_v8 = vunpack.c.l.bf16 %v643_v5  ;;  %v554_v9 = vunpack.c.h.bf16 %v643_v5  ;;  %v646_v12 = vld [vmem:[#allocation3 + $0x20] sm:$0xff]   ;;  %v647_v13 = vld [vmem:[#allocation3 + $0x28] sm:$0xff]   ;;  %s756_s24 = smov [#allocation8]  }
   0xf   :  { %v557_v10 = vunpack.c.l.bf16 %v644_v6  ;;  %v558_v11 = vunpack.c.h.bf16 %v644_v6  ;;  %v648_v14 = vld [vmem:[#allocation3 + $0x30] sm:$0xff]   ;;  %v561_v15 = vunpack.c.l.bf16 %v645_v7  ;;  %v562_v16 = vunpack.c.h.bf16 %v645_v7  ;;  %v649_v19 = vld [vmem:[#allocation3 + $0x38] sm:$0xff]   ;;  %v544_v20 = vld [vmem:[#allocation6 + $0x28] sm:$0xff]  ;;  %s493_s25 = sshll.u32 %s756_s24, 4  ;;  %s494_s25 = int_to_ptr.vmem [resolvable:$true] %s493_s25 }
  0x10   :  { %v565_v17 = vunpack.c.l.bf16 %v646_v12  ;;  %v566_v18 = vunpack.c.h.bf16 %v646_v12  ;;  %v569_v21 = vunpack.c.l.bf16 %v647_v13  ;;  %v570_v22 = vunpack.c.h.bf16 %v647_v13  ;;  %v543_v37 = vld [vmem:[#allocation6 + $0x20] sm:$0xff]  ;;  %v542_v54 = vld [vmem:[#allocation6 + $0x18] sm:$0xff]  ;;  %v541_v7 = vld [vmem:[#allocation6 + $0x10] sm:$0xff] }
  0x11   :  { %456 = vmatpush.bf16.msra.mxu0 %v545_v1  ;;  %v573_v23 = vunpack.c.l.bf16 %v648_v14  ;;  %v574_v24 = vunpack.c.h.bf16 %v648_v14  ;;  %v577_v25 = vunpack.c.l.bf16 %v649_v19  ;;  %v578_v26 = vunpack.c.h.bf16 %v649_v19  ;;  %v580_v14 = vld [vmem:[#allocation3 + $0x40] sm:$0xff]   ;;  %v651_v19 = vld [vmem:[#allocation3 + $0x50] sm:$0xff]  }
  0x12   :  { %v85_v27 = vadd.f32 %v550_v4, %v549_v3  ;;  %v92_v28 = vadd.f32 %v554_v9, %v553_v8  ;;  %v99_v29 = vadd.f32 %v558_v11, %v557_v10  ;;  %v106_v30 = vadd.f32 %v562_v16, %v561_v15  ;;  %v650_v15 = vld [vmem:[#allocation3 + $0x48] sm:$0xff]  }
  0x13   :  { %v113_v31 = vadd.f32 %v566_v18, %v565_v17  ;;  %v120_v32 = vadd.f32 %v570_v22, %v569_v21  ;;  %v127_v35 = vadd.f32 %v574_v24, %v573_v23  ;;  %v134_v36 = vadd.f32 %v578_v26, %v577_v25  ;;  %v652_v24 = vld [vmem:[#allocation3 + $0x58] sm:$0xff]   ;;  %v653_v25 = vld [vmem:[#allocation3 + $0x60] sm:$0xff]   ;;  %v540_v26 = vld [vmem:[#allocation6 + $0x8] sm:$0xff] }
  0x14   :  { %v86_v33 = vrot.slane %v85_v27, 4  ;;  %v93_v34 = vrot.slane %v92_v28, 4  ;;  %v100_v38 = vrot.slane %v99_v29, 4  ;;  %v107_v39 = vrot.slane %v106_v30, 4 }
  0x15   :  { %457 = vmatpush.bf16.msra.mxu0 %v544_v20  ;;  %v114_v40 = vrot.slane %v113_v31, 4  ;;  %v121_v41 = vrot.slane %v120_v32, 4  ;;  %v128_v44 = vrot.slane %v127_v35, 4  ;;  %v135_v45 = vrot.slane %v134_v36, 4 }
  0x16   :  { %v87_v42 = vadd.f32 %v86_v33, %v85_v27  ;;  %v94_v43 = vadd.f32 %v93_v34, %v92_v28  ;;  %v101_v46 = vadd.f32 %v100_v38, %v99_v29  ;;  %v108_v47 = vadd.f32 %v107_v39, %v106_v30 }
  0x17   :  { %v115_v48 = vadd.f32 %v114_v40, %v113_v31  ;;  %v122_v49 = vadd.f32 %v121_v41, %v120_v32  ;;  %v129_v52 = vadd.f32 %v128_v44, %v127_v35  ;;  %v136_v53 = vadd.f32 %v135_v45, %v134_v36  ;;  %v654_v31 = vld [vmem:[#allocation3 + $0x68] sm:$0xff]   ;;  %v655_v32 = vld [vmem:[#allocation3 + $0x70] sm:$0xff]  }
  0x18   :  { %v88_v50 = vrot.slane %v87_v42, 2  ;;  %v95_v51 = vrot.slane %v94_v43, 2  ;;  %v102_v55 = vrot.slane %v101_v46, 2  ;;  %v109_v56 = vrot.slane %v108_v47, 2 }
  0x19   :  { %458 = vmatpush.bf16.msra.mxu0 %v543_v37  ;;  %v116_v57 = vrot.slane %v115_v48, 2  ;;  %v123_v58 = vrot.slane %v122_v49, 2  ;;  %v130_v61 = vrot.slane %v129_v52, 2  ;;  %v137_v62 = vrot.slane %v136_v53, 2  ;;  %v656_v37 = vld [vmem:[#allocation3 + $0x78] sm:$0xff]  }
  0x1a   :  { %v89_v59 = vadd.f32 %v88_v50, %v87_v42  ;;  %v96_v60 = vadd.f32 %v95_v51, %v94_v43  ;;  %v103_v63 = vadd.f32 %v102_v55, %v101_v46  ;;  %v110_v0 = vadd.f32 %v109_v56, %v108_v47  ;;  %v539_v46 = vld [vmem:[#allocation6] sm:$0xff] }
  0x1b   :  { %v117_v1 = vadd.f32 %v116_v57, %v115_v48  ;;  %v124_v2 = vadd.f32 %v123_v58, %v122_v49  ;;  %v131_v5 = vadd.f32 %v130_v61, %v129_v52  ;;  %v138_v6 = vadd.f32 %v137_v62, %v136_v53 }
  0x1c   :  { %v90_v3 = vrot.slane %v89_v59, 1  ;;  %v97_v4 = vrot.slane %v96_v60, 1  ;;  %v104_v8 = vrot.slane %v103_v63, 1  ;;  %v111_v9 = vrot.slane %v110_v0, 1 }
  0x1d   :  { %459 = vmatpush.bf16.msra.mxu0 %v542_v54  ;;  %v118_v10 = vrot.slane %v117_v1, 1  ;;  %v125_v11 = vrot.slane %v124_v2, 1  ;;  %v132_v18 = vrot.slane %v131_v5, 1  ;;  %v139_v22 = vrot.slane %v138_v6, 1 }
  0x1e   :  { %v91_v12 = vadd.f32 %v90_v3, %v89_v59  ;;  %v98_v13 = vadd.f32 %v97_v4, %v96_v60  ;;  %v105_v16 = vadd.f32 %v104_v8, %v103_v63  ;;  %v112_v17 = vadd.f32 %v111_v9, %v110_v0 }
  0x1f   :  { %v119_v20 = vadd.f32 %v118_v10, %v117_v1  ;;  %v783_v21 = vadd.f32 %v125_v11, %v124_v2  ;;  %v581_v28 = vunpack.c.l.bf16 %v580_v14  ;;  %v582_v29 = vunpack.c.h.bf16 %v580_v14 }
  0x20   :  { %v150_v23 = vsel %vm149_vm0, %v98_v13, %v91_v12  ;;  %v585_v30 = vunpack.c.l.bf16 %v650_v15  ;;  %v586_v34 = vunpack.c.h.bf16 %v650_v15  ;;  %v589_v35 = vunpack.c.l.bf16 %v651_v19 }
  0x21   :  { %460 = vmatpush.bf16.msra.mxu0 %v541_v7  ;;  %v152_v27 = vsel %vm151_vm1, %v105_v16, %v150_v23  ;;  %v590_v36 = vunpack.c.h.bf16 %v651_v19  ;;  %v593_v38 = vunpack.c.l.bf16 %v652_v24  ;;  %v594_v39 = vunpack.c.h.bf16 %v652_v24 }
  0x22   :  { %v154_v33 = vsel %vm153_vm2, %v112_v17, %v152_v27  ;;  %v597_v40 = vunpack.c.l.bf16 %v653_v25  ;;  %v598_v41 = vunpack.c.h.bf16 %v653_v25  ;;  %v788_v42 = vadd.f32 %v132_v18, %v131_v5 }
  0x23   :  { %v601_v43 = vunpack.c.l.bf16 %v654_v31  ;;  %v602_v44 = vunpack.c.h.bf16 %v654_v31  ;;  %v605_v45 = vunpack.c.l.bf16 %v655_v32  ;;  %v790_v47 = vadd.f32 %v139_v22, %v138_v6 }
  0x24   :  { %v606_v48 = vunpack.c.h.bf16 %v655_v32  ;;  %v609_v49 = vunpack.c.l.bf16 %v656_v37  ;;  %v610_v50 = vunpack.c.h.bf16 %v656_v37  ;;  %v156_v51 = vsel %vm155_vm3, %v119_v20, %v154_v33 }
  0x25   :  { %461 = vmatpush.bf16.msra.mxu0 %v540_v26  ;;  %v200_v52 = vadd.f32 %v582_v29, %v581_v28  ;;  %v207_v53 = vadd.f32 %v586_v34, %v585_v30  ;;  %v214_v54 = vadd.f32 %v590_v36, %v589_v35  ;;  %v221_v55 = vadd.f32 %v594_v39, %v593_v38  ;;  %v612_v36 = vld [vmem:[#allocation3 + $0x80] sm:$0xff]  }
  0x26   :  { %v228_v56 = vadd.f32 %v598_v41, %v597_v40  ;;  %v235_v57 = vadd.f32 %v602_v44, %v601_v43  ;;  %v242_v58 = vadd.f32 %v606_v48, %v605_v45  ;;  %v249_v62 = vadd.f32 %v610_v50, %v609_v49  ;;  %v657_v41 = vld [vmem:[#allocation3 + $0x88] sm:$0xff]   ;;  %v658_v43 = vld [vmem:[#allocation3 + $0x90] sm:$0xff]   ;;  %v659_v49 = vld [vmem:[#allocation3 + $0x98] sm:$0xff]  }
  0x27   :  { %v201_v59 = vrot.slane %v200_v52, 4  ;;  %v208_v60 = vrot.slane %v207_v53, 4  ;;  %v215_v61 = vrot.slane %v214_v54, 4  ;;  %v222_v63 = vrot.slane %v221_v55, 4 }
  0x28   :  { %v229_v0 = vrot.slane %v228_v56, 4  ;;  %v236_v1 = vrot.slane %v235_v57, 4  ;;  %v243_v2 = vrot.slane %v242_v58, 4  ;;  %v250_v6 = vrot.slane %v249_v62, 4 }
  0x29   :  { %462 = vmatpush.bf16.msra.mxu0 %v539_v46  ;;  %v202_v3 = vadd.f32 %v201_v59, %v200_v52  ;;  %v209_v4 = vadd.f32 %v208_v60, %v207_v53  ;;  %v216_v5 = vadd.f32 %v215_v61, %v214_v54  ;;  %v223_v7 = vadd.f32 %v222_v63, %v221_v55  ;;  %v660_v55 = vld [vmem:[#allocation3 + $0xa0] sm:$0xff]   ;;  %v662_v59 = vld [vmem:[#allocation3 + $0xb0] sm:$0xff]  }
  0x2a   :  { %v230_v8 = vadd.f32 %v229_v0, %v228_v56  ;;  %v237_v9 = vadd.f32 %v236_v1, %v235_v57  ;;  %v244_v10 = vadd.f32 %v243_v2, %v242_v58  ;;  %v251_v14 = vadd.f32 %v250_v6, %v249_v62  ;;  %v661_v56 = vld [vmem:[#allocation3 + $0xa8] sm:$0xff]   ;;  %v663_v0 = vld [vmem:[#allocation3 + $0xb8] sm:$0xff]  }
  0x2b   :  { %v203_v11 = vrot.slane %v202_v3, 2  ;;  %v210_v12 = vrot.slane %v209_v4, 2  ;;  %v217_v13 = vrot.slane %v216_v5, 2  ;;  %v224_v15 = vrot.slane %v223_v7, 2 }
  0x2c   :  { %v231_v16 = vrot.slane %v230_v8, 2  ;;  %v238_v17 = vrot.slane %v237_v9, 2  ;;  %v245_v18 = vrot.slane %v244_v10, 2  ;;  %vm159_vm5 = vcmask 1046534  }
  0x2d   :  { %v204_v19 = vadd.f32 %v203_v11, %v202_v3  ;;  %v211_v20 = vadd.f32 %v210_v12, %v209_v4  ;;  %v218_v22 = vadd.f32 %v217_v13, %v216_v5  ;;  %v252_v23 = vrot.slane %v251_v14, 2 }
  0x2e   :  { %v225_v24 = vadd.f32 %v224_v15, %v223_v7  ;;  %v232_v25 = vadd.f32 %v231_v16, %v230_v8  ;;  %v239_v26 = vadd.f32 %v238_v17, %v237_v9  ;;  %v246_v27 = vadd.f32 %v245_v18, %v244_v10 }
  0x2f   :  { %v205_v28 = vrot.slane %v204_v19, 1  ;;  %v212_v29 = vrot.slane %v211_v20, 1  ;;  %v219_v30 = vrot.slane %v218_v22, 1  ;;  %v253_v31 = vadd.f32 %v252_v23, %v251_v14 }
  0x30   :  { %v226_v32 = vrot.slane %v225_v24, 1  ;;  %v233_v33 = vrot.slane %v232_v25, 1  ;;  %v240_v34 = vrot.slane %v239_v26, 1  ;;  %v247_v35 = vrot.slane %v246_v27, 1 }
  0x31   :  { %v158_v37 = vsel %vm157_vm4, %v783_v21, %v156_v51  ;;  %v206_v38 = vadd.f32 %v205_v28, %v204_v19  ;;  %v213_v39 = vadd.f32 %v212_v29, %v211_v20  ;;  %v220_v40 = vadd.f32 %v219_v30, %v218_v22 }
  0x32   :  { %v227_v44 = vadd.f32 %v226_v32, %v225_v24  ;;  %v234_v45 = vadd.f32 %v233_v33, %v232_v25  ;;  %v241_v46 = vadd.f32 %v240_v34, %v239_v26  ;;  %v254_v48 = vrot.slane %v253_v31, 1 }
  0x33   :  { %v248_v50 = vadd.f32 %v247_v35, %v246_v27  ;;  %v264_v52 = vsel %vm149_vm0, %v213_v39, %v206_v38  ;;  %v613_v53 = vunpack.c.l.bf16 %v612_v36  ;;  %v614_v54 = vunpack.c.h.bf16 %v612_v36 }
  0x34   :  { %v265_v57 = vsel %vm151_vm1, %v220_v40, %v264_v52  ;;  %v617_v21 = vunpack.c.l.bf16 %v657_v41  ;;  %v618_v51 = vunpack.c.h.bf16 %v657_v41  ;;  %v621_v58 = vunpack.c.l.bf16 %v658_v43 }
  0x35   :  { %v266_v60 = vsel %vm153_vm2, %v227_v44, %v265_v57  ;;  %v622_v61 = vunpack.c.h.bf16 %v658_v43  ;;  %v625_v62 = vunpack.c.l.bf16 %v659_v49  ;;  %v626_v63 = vunpack.c.h.bf16 %v659_v49 }
  0x36   :  { %v267_v1 = vsel %vm155_vm3, %v234_v45, %v266_v60  ;;  %v629_v2 = vunpack.c.l.bf16 %v660_v55  ;;  %v630_v3 = vunpack.c.h.bf16 %v660_v55  ;;  %v633_v4 = vunpack.c.l.bf16 %v661_v56 }
  0x37   :  { %v268_v5 = vsel %vm157_vm4, %v241_v46, %v267_v1  ;;  %v634_v6 = vunpack.c.h.bf16 %v661_v56  ;;  %v637_v7 = vunpack.c.l.bf16 %v662_v59  ;;  %v638_v8 = vunpack.c.h.bf16 %v662_v59 }
  0x38   :  { %v160_v9 = vsel %vm159_vm5, %v788_v42, %v158_v37  ;;  %v641_v10 = vunpack.c.l.bf16 %v663_v0  ;;  %v642_v11 = vunpack.c.h.bf16 %v663_v0  ;;  %v308_v12 = vadd.f32 %v614_v54, %v613_v53 }
  0x39   :  { %v255_v13 = vadd.f32 %v254_v48, %v253_v31  ;;  %v315_v14 = vadd.f32 %v618_v51, %v617_v21  ;;  %v322_v15 = vadd.f32 %v622_v61, %v621_v58  ;;  %v329_v16 = vadd.f32 %v626_v63, %v625_v62 }
  0x3a   :  { %v269_v17 = vsel %vm159_vm5, %v248_v50, %v268_v5  ;;  %v309_v18 = vrot.slane %v308_v12, 4  ;;  %v336_v19 = vadd.f32 %v630_v3, %v629_v2  ;;  %v343_v20 = vadd.f32 %v634_v6, %v633_v4 }
  0x3b   :  { %v316_v22 = vrot.slane %v315_v14, 4  ;;  %v323_v23 = vrot.slane %v322_v15, 4  ;;  %v330_v24 = vrot.slane %v329_v16, 4  ;;  %v350_v25 = vadd.f32 %v638_v8, %v637_v7 }
  0x3c   :  { %vm161_vm6 = vcmask 1047559   ;;  %v310_v26 = vadd.f32 %v309_v18, %v308_v12  ;;  %v337_v27 = vrot.slane %v336_v19, 4  ;;  %v344_v42 = vrot.slane %v343_v20, 4 }
  0x3d   :  { %v357_v28 = vadd.f32 %v642_v11, %v641_v10  ;;  %v317_v29 = vadd.f32 %v316_v22, %v315_v14  ;;  %v324_v30 = vadd.f32 %v323_v23, %v322_v15  ;;  %v331_v31 = vadd.f32 %v330_v24, %v329_v16 }
  0x3e   :  { %v351_v32 = vrot.slane %v350_v25, 4  ;;  %v311_v33 = vrot.slane %v310_v26, 2  ;;  %v338_v34 = vadd.f32 %v337_v27, %v336_v19  ;;  %v345_v35 = vadd.f32 %v344_v42, %v343_v20 }
  0x3f   :  { %v358_v36 = vrot.slane %v357_v28, 4  ;;  %v318_v37 = vrot.slane %v317_v29, 2  ;;  %v325_v38 = vrot.slane %v324_v30, 2  ;;  %v332_v39 = vrot.slane %v331_v31, 2 }
  0x40   :  { %v352_v40 = vadd.f32 %v351_v32, %v350_v25  ;;  %v312_v41 = vadd.f32 %v311_v33, %v310_v26  ;;  %v339_v43 = vrot.slane %v338_v34, 2  ;;  %v346_v44 = vrot.slane %v345_v35, 2 }
  0x41   :  { %v359_v45 = vadd.f32 %v358_v36, %v357_v28  ;;  %v319_v46 = vadd.f32 %v318_v37, %v317_v29  ;;  %v326_v48 = vadd.f32 %v325_v38, %v324_v30  ;;  %v333_v49 = vadd.f32 %v332_v39, %v331_v31 }
  0x42   :  { %v353_v50 = vrot.slane %v352_v40, 2  ;;  %v313_v52 = vrot.slane %v312_v41, 1  ;;  %v340_v53 = vadd.f32 %v339_v43, %v338_v34  ;;  %v347_v54 = vadd.f32 %v346_v44, %v345_v35 }
  0x43   :  { %v360_v55 = vrot.slane %v359_v45, 2  ;;  %v320_v56 = vrot.slane %v319_v46, 1  ;;  %v327_v57 = vrot.slane %v326_v48, 1  ;;  %v334_v21 = vrot.slane %v333_v49, 1 }
  0x44   :  { %v354_v51 = vadd.f32 %v353_v50, %v352_v40  ;;  %v314_v58 = vadd.f32 %v313_v52, %v312_v41  ;;  %v341_v59 = vrot.slane %v340_v53, 1  ;;  %v348_v60 = vrot.slane %v347_v54, 1 }
  0x45   :  { %v361_v61 = vadd.f32 %v360_v55, %v359_v45  ;;  %v321_v62 = vadd.f32 %v320_v56, %v319_v46  ;;  %v328_v63 = vadd.f32 %v327_v57, %v326_v48  ;;  %v335_v0 = vadd.f32 %v334_v21, %v333_v49 }
  0x46   :  { %v355_v1 = vrot.slane %v354_v51, 1  ;;  %v342_v2 = vadd.f32 %v341_v59, %v340_v53  ;;  %v162_v4 = vsel %vm161_vm6, %v790_v47, %v160_v9  ;;  %v270_v5 = vsel %vm161_vm6, %v255_v13, %v269_v17  ;;  %v669_v17 = vld [vmem:[%s821_s2] ss:$0 sm:$0xff]  ;;  %s495_s2 = sshll.u32 %s822_s3, 4  ;;  %s496_s2 = int_to_ptr.hbm [resolvable:$true] %s495_s2 }
  0x47   :  { %v362_v3 = vrot.slane %v361_v61, 1  ;;  %v349_v6 = vadd.f32 %v348_v60, %v347_v54  ;;  %v372_v7 = vsel %vm149_vm0, %v321_v62, %v314_v58  ;;  %v272_v14 = vadd.f32 %v270_v5, %v162_v4 }
  0x48   :  { %v356_v8 = vadd.f32 %v355_v1, %v354_v51  ;;  %v373_v10 = vsel %vm151_vm1, %v328_v63, %v372_v7 }
  0x49   :  { %v363_v11 = vadd.f32 %v362_v3, %v361_v61  ;;  %v374_v12 = vsel %vm153_vm2, %v335_v0, %v373_v10 }
  0x4a   :  { %v375_v15 = vsel %vm155_vm3, %v342_v2, %v374_v12 }
  0x4b   :  { %v376_v16 = vsel %vm157_vm4, %v349_v6, %v375_v15 }
  0x4c   :  { %v377_v18 = vsel %vm159_vm5, %v356_v8, %v376_v16 }
  0x4d   :  { %v378_v47 = vsel %vm161_vm6, %v363_v11, %v377_v18 }
  0x4e   :  { %v380_v9 = vadd.f32 %v378_v47, %v272_v14 }
  0x50   :  { %v386_v13 = vpack.c.bf16 %v380_v9, %v380_v9 }
  0x52   :  { %463 = vmatmul.bf16.vlgmr.msra.gmra.mxu0 %v386_v13 }
  0xcf   :  { %v464_v19 = vpop.f32.mrf.mxu0 }
  0xd0   :  { %v465_v20 = vadd.f32 %v669_v17, %v464_v19 }
  0xd2   :  { %v538_v22 = vmul.f32 -1.442695, %v465_v20 }
  0xd4   :  { %670 = vpow2.f32 %v538_v22 }
  0xd7   :  { %v466_v23 = vpop.f32.mrf.mxu0 }
  0xda   :  { %v671_v24 = vpop.eup %670 }
  0xdb   :  { %v471_v25 = vadd.f32 1.0, %v671_v24 }
  0xdd   :  { %672 = vrcp.f32 %v471_v25  ;;  %v483_v28 = vand.u32 2147483648, %v471_v25  ;;  %v481_v30 = vand.u32 2147483647, %v471_v25  ;;  %vm477_vm8 = vweird.f32 %v471_v25 }
  0xdf   :  { %v484_v32 = vor.u32 1.1754944e-38, %v483_v28  ;;  %vm482_vm10 = vcmp.eq.f32.partialorder %v481_v30, 8.507059e+37 }
  0xe3   :  { %v673_v26 = vpop.eup %672 }
  0xe4   :  { %v473_v27 = vmul.f32 %v673_v26, %v471_v25  ;;  %vm478_vm7 = vweird.f32 %v673_v26 }
  0xe5   :  { %vm479_vm9 = vmor %vm477_vm8, %vm478_vm7 }
  0xe6   :  { %v474_v42 = vsub.f32 1.0, %v473_v27 }
  0xe8   :  { %v475_v29 = vmul.f32 %v673_v26, %v474_v42 }
  0xea   :  { %v476_v31 = vadd.f32 %v673_v26, %v475_v29 }
  0xec   :  { %v480_v33 = vsel %vm479_vm9, %v673_v26, %v476_v31 }
  0xed   :  { %v485_v34 = vsel %vm482_vm10, %v484_v32, %v480_v33 }
  0xee   :  { %487 = vst [vmem:[#allocation8] sm:$0xff] %v485_v34 }
  0xef   :  { %498 = dma.vmem_to_hbm [thread:$0]  %s494_s25, 128, %s496_s2, [#allocation5]  }
  0xf0   :  { %750 = dma.done.wait [#allocation5], 128  }
  0xf1   :  { %751 = vsyncadd [#allocation5], 4294967168 }
  0xf2   :  { %503 = vsyncpa [#allocation4], 1 }
  0xf3   :  { %504 = vsyncpa [#allocation7], 1 }
  0xf4   :  { %505 = vsyncpa [#allocation5], 1 }

</bundles_post_ra>
